<compile_context>
chip_gen: v7x
topology: tpu7x:2x2x1
jax: 0.10.0
libtpu: 0.0.40
codegen_flags: <defaults>
</compile_context>

<pallas_src>
import jax
import jax.numpy as jnp
from jax.experimental import pallas as pl
from jax.experimental.pallas import tpu as pltpu  # noqa: F401  (TPU backend)


def _simplenet_kernel(x_ref, w1_ref, b1_ref, w2_ref, b2_ref, o_ref):
    """Fused MLP: out = relu(x @ W1 + b1) @ W2 + b2, all in one kernel."""
    x = x_ref[...]
    # layer 1: bias as accumulator init + MXU matmul, ReLU on the VPU
    h = b1_ref[...] + jnp.dot(x, w1_ref[...], preferred_element_type=jnp.float32)
    h = jnp.maximum(h, 0.0)
    # layer 2: bias as accumulator init + MXU matmul (hidden never leaves the chip)
    out = b2_ref[...] + jnp.dot(h, w2_ref[...], preferred_element_type=jnp.float32)
    o_ref[...] = out.astype(o_ref.dtype)


def simplenet_forward(x, params):
    """SimpleNet.forward as one fused pallas_call."""
    b, f_in = x.shape
    hid = params["w1"].shape[1]
    f_out = params["w2"].shape[1]
    b1 = params["b1"].reshape(1, hid)
    b2 = params["b2"].reshape(1, f_out)

    flops = 2 * b * f_in * hid + 2 * b * hid * f_out + 2 * b * hid + b * f_out
    bytes_accessed = 4 * (
        x.size + params["w1"].size + b1.size + params["w2"].size + b2.size + b * f_out
    )

    return pl.pallas_call(
        _simplenet_kernel,
        out_shape=jax.ShapeDtypeStruct((b, f_out), jnp.float32),
        in_specs=[
            pl.BlockSpec(x.shape, lambda: (0, 0)),
            pl.BlockSpec(params["w1"].shape, lambda: (0, 0)),
            pl.BlockSpec(b1.shape, lambda: (0, 0)),
            pl.BlockSpec(params["w2"].shape, lambda: (0, 0)),
            pl.BlockSpec(b2.shape, lambda: (0, 0)),
        ],
        out_specs=pl.BlockSpec((b, f_out), lambda: (0, 0)),
        cost_estimate=pl.CostEstimate(
            flops=int(flops), transcendentals=0, bytes_accessed=int(bytes_accessed)
        ),
    )(x, params["w1"], b1, params["w2"], b2)


def _reference_forward(x, params):
    """Pure-JAX reference for correctness checking (same math as nn.Linear)."""
    h = jax.nn.relu(x @ params["w1"] + params["b1"])
    return h @ params["w2"] + params["b2"]


def _init_params(key, in_feats, hid_feats, out_feats):
    """Deterministic synthetic init. Weights stored as [in, out] = W.T of nn.Linear."""
    ks = jax.random.split(key, 4)
    s1 = 1.0 / jnp.sqrt(in_feats)
    s2 = 1.0 / jnp.sqrt(hid_feats)
    return {
        "w1": jax.random.uniform(ks[0], (in_feats, hid_feats), jnp.float32, -s1, s1),
        "b1": jax.random.uniform(ks[1], (hid_feats,), jnp.float32, -s1, s1),
        "w2": jax.random.uniform(ks[2], (hid_feats, out_feats), jnp.float32, -s2, s2),
        "b2": jax.random.uniform(ks[3], (out_feats,), jnp.float32, -s2, s2),
    }


if __name__ == "__main__":
    batch = 8
    input_size = 16
    hidden = 150      # fixed by the module definition
    output_size = 10

    key = jax.random.PRNGKey(0)
    k_x, k_params = jax.random.split(key, 2)

    x = jax.random.normal(k_x, (batch, input_size), jnp.float32)
    params = _init_params(k_params, input_size, hidden, output_size)

    out = simplenet_forward(x, params)
    out = jax.block_until_ready(out)

    ref = _reference_forward(x, params)
    assert out.shape == (batch, output_size)
    assert jnp.allclose(out, ref, atol=1e-5, rtol=1e-5), "Pallas output mismatch vs reference"

    print("KERNEL_OK")
</pallas_src>

<mosaic_0001>
module attributes {stable_mosaic.version = 11 : i64} {
  func.func @_simplenet_kernel(%arg0: memref<8x16xf32, #tpu.memory_space<vmem>>, %arg1: memref<16x150xf32, #tpu.memory_space<vmem>>, %arg2: memref<1x150xf32, #tpu.memory_space<vmem>>, %arg3: memref<150x10xf32, #tpu.memory_space<vmem>>, %arg4: memref<1x10xf32, #tpu.memory_space<vmem>>, %arg5: memref<8x10xf32, #tpu.memory_space<vmem>>) attributes {dimension_semantics = [], scalar_prefetch = 0 : i64, scratch_operands = 0 : i64, tpu.core_type = #tpu.core_type<tc>} {
    %c0 = arith.constant 0 : index
    %c0_0 = arith.constant 0 : index
    %0 = vector.load %arg0[%c0, %c0_0] : memref<8x16xf32, #tpu.memory_space<vmem>>, vector<8x16xf32>
    %c0_1 = arith.constant 0 : index
    %c0_2 = arith.constant 0 : index
    %1 = vector.load %arg2[%c0_1, %c0_2] : memref<1x150xf32, #tpu.memory_space<vmem>>, vector<1x150xf32>
    %c0_3 = arith.constant 0 : index
    %c0_4 = arith.constant 0 : index
    %2 = vector.load %arg1[%c0_3, %c0_4] : memref<16x150xf32, #tpu.memory_space<vmem>>, vector<16x150xf32>
    %cst = arith.constant dense<0.000000e+00> : vector<8x150xf32>
    %3 = tpu.matmul %0, %2, %cst {dimension_numbers = #tpu.dot_dimension_numbers<[1], [0], [0], [1], [0, 0, 1, 1], [], []>} : vector<8x16xf32>, vector<16x150xf32>, vector<8x150xf32> -> vector<8x150xf32>
    %4 = vector.broadcast %1 : vector<1x150xf32> to vector<8x150xf32>
    %5 = arith.addf %4, %3 : vector<8x150xf32>
    %cst_5 = arith.constant 0.000000e+00 : f32
    %6 = vector.broadcast %cst_5 : f32 to vector<8x150xf32>
    %7 = arith.maximumf %5, %6 : vector<8x150xf32>
    %c0_6 = arith.constant 0 : index
    %c0_7 = arith.constant 0 : index
    %8 = vector.load %arg4[%c0_6, %c0_7] : memref<1x10xf32, #tpu.memory_space<vmem>>, vector<1x10xf32>
    %c0_8 = arith.constant 0 : index
    %c0_9 = arith.constant 0 : index
    %9 = vector.load %arg3[%c0_8, %c0_9] : memref<150x10xf32, #tpu.memory_space<vmem>>, vector<150x10xf32>
    %cst_10 = arith.constant dense<0.000000e+00> : vector<8x10xf32>
    %10 = tpu.matmul %7, %9, %cst_10 {dimension_numbers = #tpu.dot_dimension_numbers<[1], [0], [0], [1], [0, 0, 1, 1], [], []>} : vector<8x150xf32>, vector<150x10xf32>, vector<8x10xf32> -> vector<8x10xf32>
    %11 = vector.broadcast %8 : vector<1x10xf32> to vector<8x10xf32>
    %12 = arith.addf %11, %10 : vector<8x10xf32>
    %c0_11 = arith.constant 0 : index
    %c0_12 = arith.constant 0 : index
    %13 = vector.load %arg5[%c0_11, %c0_12] : memref<8x10xf32, #tpu.memory_space<vmem>>, vector<8x10xf32>
    tpu.vector_store %arg5[%c0_11, %c0_12], %12 {strides = array<i32>} : memref<8x10xf32, #tpu.memory_space<vmem>>, vector<8x10xf32>,
    return
  }
}

</mosaic_0001>

<bundles_post_ra>
// kernel: tpu_custom_call.1
= control target key start
LH: loop header
LB: loop body
LE: loop exit
PB: predicated region body
PF: predicated region fallthrough
CT: control target
= control target key end

     0   :  { %v300_v5 = vmov 0.0   ;;  %v301_v6 = vmov 0.0|0.0   ;;  %vm27_vm0 = vcmask 130048   ;;  %s423_s0 = inlined_call_operand.vmem [shape: f32[8,16], index: 0, kind: input, shape index: {}]   ;;  %s424_s1 = inlined_call_operand.vmem [shape: f32[16,150], index: 1, kind: input, shape index: {}]   ;;  %s425_s2 = inlined_call_operand.vmem [shape: f32[1,150], index: 2, kind: input, shape index: {}]   ;;  %s426_s3 = inlined_call_operand.vmem [shape: f32[150,10], index: 3, kind: input, shape index: {}]   ;;  %s427_s4 = inlined_call_operand.vmem [shape: f32[1,10], index: 4, kind: input, shape index: {}]   ;;  %s428_s5 = inlined_call_operand.hbm [shape: f32[8,10], index: 5, kind: output, shape index: {}]  }
   0x1   :  { %v24_v0 = vld [vmem:[%s424_s1 + $0x8] sm:$0xff]  ;;  %v26_v1 = vld [vmem:[%s424_s1 + $0x18] sm:$0xff]  ;;  %v23_v2 = vld [vmem:[%s424_s1] sm:$0xff]  ;;  %95 = vmatprep.mubr.f32.mxu0 %v300_v5  ;;  %246 = vmatprep.subr.bf16.mxu1 %v301_v6 }
   0x2   :  { %v242_v3 = vpack.c.bf16 %v26_v1, %v24_v0  ;;  %v25_v4 = vld [vmem:[%s424_s1 + $0x10] sm:$0xff]  ;;  %v118_v7 = vld [vmem:[%s426_s3] sm:$0xff]  ;;  %v119_v9 = vld [vmem:[%s426_s3 + $0x8] sm:$0xff] }
   0x3   :  { %v244_v8 = vpack.c.bf16 %v25_v4, %v23_v2  ;;  %v120_v10 = vld [vmem:[%s426_s3 + $0x10] sm:$0xff]  ;;  %v121_v11 = vld [vmem:[%s426_s3 + $0x18] sm:$0xff]  ;;  %v247_v12 = vpack.c.bf16 %v119_v9, %v118_v7  ;;  %v21_v13 = vld [vmem:[%s423_s0] sm:$0xff] }
   0x4   :  { %243 = vmatprep.subr.bf16.mxu0 %v242_v3  ;;  %v250_v14 = vpack.c.bf16 %v121_v11, %v120_v10  ;;  %v122_v15 = vld [vmem:[%s426_s3 + $0x20] sm:$0xff]  ;;  %v123_v16 = vld [vmem:[%s426_s3 + $0x28] sm:$0xff] }
   0x5   :  { %245 = vmatpush1.bf16.msra.mxu0 %v244_v8  ;;  %248 = vmatpush1.bf16.msra.mxu1 %v247_v12 }
   0x6   :  { %249 = vmatprep.subr.bf16.mxu1 %v301_v6 }
   0x8   :  { %238 = vmatmul.mubr.msk.f32.vlgmr.msra.gmra.mrb[0].mxu0 %vm27_vm0, %v21_v13 }
   0x9   :  { %10 = vsyncpa [#allocation3], 0  ;;  %251 = vmatpush1.bf16.msra.mxu1 %v250_v14  ;;  %v253_v17 = vpack.c.bf16 %v123_v16, %v122_v15  ;;  %v124_v18 = vld [vmem:[%s426_s3 + $0x30] sm:$0xff]  ;;  %v125_v19 = vld [vmem:[%s426_s3 + $0x38] sm:$0xff]  ;;  %vm141_vm1 = vcmask 1045504   ;;  %v103_v37 = vlaneseq  ;;  %vm137_vm2 = vcmask 179200  }
   0xa   :  { %252 = vmatprep.subr.bf16.mxu1 %v301_v6  ;;  %v256_v20 = vpack.c.bf16 %v125_v19, %v124_v18  ;;  %v126_v21 = vld [vmem:[%s426_s3 + $0x40] sm:$0xff]  ;;  %v127_v22 = vld [vmem:[%s426_s3 + $0x48] sm:$0xff]  ;;  %v128_v24 = vld [vmem:[%s426_s3 + $0x50] sm:$0xff]  ;;  %s302_s0 = smov [#allocation2]   ;;  %vm222_vm3 = vcmask 80896  }
   0xb   :  { %v259_v23 = vpack.c.bf16 %v127_v22, %v126_v21  ;;  %v129_v25 = vld [vmem:[%s426_s3 + $0x58] sm:$0xff]  ;;  %v130_v27 = vld [vmem:[%s426_s3 + $0x60] sm:$0xff]  ;;  %v131_v28 = vld [vmem:[%s426_s3 + $0x68] sm:$0xff]  ;;  %v104_v38 = vshrl.u32 %v103_v37, 7  ;;  %s230_s16 = sshll.u32 %s302_s0, 4  ;;  %s231_s16 = int_to_ptr.vmem [resolvable:$true] %s230_s16 }
   0xc   :  { %v262_v26 = vpack.c.bf16 %v129_v25, %v128_v24  ;;  %v265_v29 = vpack.c.bf16 %v131_v28, %v130_v27  ;;  %v132_v30 = vld [vmem:[%s426_s3 + $0x70] sm:$0xff]  ;;  %v133_v31 = vld [vmem:[%s426_s3 + $0x78] sm:$0xff]  ;;  %v134_v33 = vld [vmem:[%s426_s3 + $0x80] sm:$0xff]  ;;  %p281_p1 = scmp.lt.s32.totalorder %s231_s16, %s231_s16 }
   0xd   :  { %254 = vmatpush1.bf16.msra.mxu1 %v253_v17  ;;  %v268_v32 = vpack.c.bf16 %v133_v31, %v132_v30  ;;  %v135_v34 = vld [vmem:[%s426_s3 + $0x88] sm:$0xff]  ;;  %v136_v36 = vld [vmem:[%s426_s3 + $0x90] sm:$0x3f]  ;;  %v105_v39 = vsub.s32 0, %v104_v38  ;;  %v22_v40 = vld [vmem:[%s425_s2] sm:$0x3] }
   0xe   :  { %255 = vmatprep.subr.bf16.mxu1 %v301_v6  ;;  %v271_v35 = vpack.c.bf16 %v135_v34, %v134_v33  ;;  %v109_v41 = vsub.s32 1, %v104_v38  ;;  %v241_v50 = vld [vmem:[%s427_s4] ss:$0 sm:$0xff]  ;;  %s276_s2 = scalar_lea.vmem %s231_s16, 128 }
   0xf   :  { %v106_v42 = vrot.slane %v22_v40, %v105_v39  ;;  %p277_p0 = scmp.ne.s32.totalorder %s231_s16, %s276_s2  ;;  %p282_p2 = scmp.lt.s32.totalorder %s276_s2, %s276_s2 }
  0x10   :  { %v110_v43 = vrot.slane %v22_v40, %v109_v41 }
  0x11   :  { %257 = vmatpush1.bf16.msra.mxu1 %v256_v20  ;;  %p283_p3 = por %p282_p2, %p281_p1 }
  0x12   :  { %258 = vmatprep.subr.bf16.mxu1 %v301_v6 }
  0x13   :  { %p284_p4 = pnand %p283_p3, %p277_p0 }
  0x15   :  { %260 = vmatpush1.bf16.msra.mxu1 %v259_v23 }
  0x16   :  { %261 = vmatprep.subr.bf16.mxu1 %v301_v6 }
  0x19   :  { %263 = vmatpush1.bf16.msra.mxu1 %v262_v26 }
  0x1a   :  { %264 = vmatprep.subr.bf16.mxu1 %v301_v6 }
  0x1d   :  { %266 = vmatpush1.bf16.msra.mxu1 %v265_v29 }
  0x1e   :  { %267 = vmatprep.subr.bf16.mxu1 %v301_v6 }
  0x21   :  { %269 = vmatpush1.bf16.msra.mxu1 %v268_v32 }
  0x22   :  { %270 = vmatprep.subr.bf16.mxu1 %v301_v6 }
  0x25   :  { %272 = vmatpush1.bf16.msra.mxu1 %v271_v35 }
  0x26   :  { %181 = vmatprep.subr.mxu1 %v300_v5 }
  0x29   :  { %239 = vmatpush1.msk.msra.mxu1 %vm141_vm1, %v136_v36 }
  0xdb   :  { %v97_v44 = vpop.f32.mrb[0].mxu0 }
  0xdc   :  { %v113_v45 = vadd.f32 %v106_v42, %v97_v44  ;;  %v99_v46 = vpop.f32.mrb[1].mxu0 }
  0xdd   :  { %v114_v47 = vadd.f32 %v110_v43, %v99_v46 }
  0xde   :  { %v115_v49 = vmax.f32 %v113_v45, 0.0 }
  0xdf   :  { %v116_v48 = vmax.f32 %v114_v47, 0.0 }
  0xe1   :  { %240 = vmatprep.mubr.msk.f32.mxu1 %vm137_vm2, %v116_v48 }
  0xe2   :  { %210 = vmatmul.mubr.f32.vlgmr.msra.gmra.mrb[0].mxu1 %v115_v49 }
 0x1b5   :  { %v211_v51 = vpop.f32.mrb[0].mxu1 }
 0x1b6   :  { %v221_v52 = vadd.f32 %v241_v50, %v211_v51  ;;  %v213_v53 = vpop.f32.mrb[1].mxu1 }
 0x1b8   :  { %223 = vst.msk [vmem:[#allocation2] sm:$0xff] %vm222_vm3, %v221_v52 }
 0x1b9   :  { %287 = shalt.err (!%p284_p4)
}
 0x1ba   :  { %s288_s19 = scalar_lea.hbm %s428_s5, 128 }
 0x1bb   :  { %p289_p5 = scmp.ne.s32.totalorder %s428_s5, %s288_s19  ;;  %p292_p6 = scmp.lt.u32.totalorder %s288_s19, %s428_s5 }
 0x1bd   :  { %p294_p7 = pnand %p292_p6, %p289_p5 }
 0x1bf   :  { %297 = shalt.err (!%p294_p7)
}
 0x1c0   :  { %233 = dma.vmem_to_hbm [thread:$0]  %s231_s16, 128, %s428_s5, [#allocation3]  }
 0x1c1   :  { %298 = dma.done.wait [#allocation3], 128  }
 0x1c2   :  { %299 = vsyncadd [#allocation3], 4294967168 }
 0x1c3   :  { %237 = vsyncpa [#allocation3], 1 }

</bundles_post_ra>
